<compile_context>
chip_gen: v7x
topology: tpu7x:2x2x1
jax: 0.10.0
libtpu: 0.0.40
codegen_flags: <defaults>
</compile_context>

<pallas_src>
import jax
import jax.numpy as jnp
from jax.experimental import pallas as pl
from jax.experimental.pallas import tpu as pltpu

NEG_SLOPE = 0.01  # torch.nn.LeakyReLU default


def cem_kernel(x_ref, w_ref, b_ref, smat_ref, rmat_ref, bs_ref,
               concept_ref, score_ref):
    # x_ref:       (TN, D)                       tile of flattened inputs
    # w_ref:       (D, (n_concept+1)*cd)         fused, pre-transposed generator weights
    # b_ref:       (1, (n_concept+1)*cd)         fused generator biases
    # smat_ref:    ((n_concept+1)*cd, n_concept) score selection matrix (from w_score)
    # rmat_ref:    (n_concept, n_concept*cd)     score -> concept-lane expansion matrix
    # bs_ref:      (1,) in SMEM                  score bias
    # concept_ref: (TN, n_concept*cd)            lane-dense concept output slab
    # score_ref:   (TN, n_concept)               per-concept activations
    n_concept = rmat_ref.shape[0]
    cd = rmat_ref.shape[1] // n_concept

    x = x_ref[...]

    # All candidate generators in one matmul, then LeakyReLU.
    cand = jnp.dot(x, w_ref[...], preferred_element_type=jnp.float32) + b_ref[...]
    cand = jnp.where(cand >= 0, cand, NEG_SLOPE * cand)

    # Concept i uses generator i ("plus") and generator i+1 ("minus"): static lane slices.
    cp = cand[:, : n_concept * cd]
    cm = cand[:, cd: (n_concept + 1) * cd]

    # Score logits for all concepts at once: cat(cp_i, cm_i) @ w_score^T == cand @ S[:, i].
    logits = jnp.dot(cand, smat_ref[...], preferred_element_type=jnp.float32) + bs_ref[0]
    s = jax.nn.sigmoid(logits)                                   # (TN, n_concept)

    # Broadcast each score over its cd concept lanes.
    s_exp = jnp.dot(s, rmat_ref[...], preferred_element_type=jnp.float32)

    concept_ref[...] = (s_exp * cp + (1.0 - s_exp) * cm).astype(concept_ref.dtype)
    score_ref[...] = s.astype(score_ref.dtype)


def cem_forward(x, W_all, b_all, w_score, b_score, n_concept, *, max_tile_n=1024):
    """x: (B, L, D); W_all: (2*n_concept, cd, D); b_all: (2*n_concept, cd);
    w_score: (1, 2*cd); b_score: (1,)."""
    B, L, D = x.shape
    N = B * L
    cd = W_all.shape[1]
    G = n_concept + 1                      # generators actually used by the forward

    xf = x.reshape(N, D)

    # Fused generator weights, pre-transposed: column g*cd+j <- generator g, unit j.
    w_flat = W_all[:G].transpose(2, 0, 1).reshape(D, G * cd)
    b_flat = b_all[:G].reshape(1, G * cd)

    # Score selection matrix S: logits[:, i] = cp_i @ ws_plus + cm_i @ ws_minus.
    ws_plus = w_score[0, :cd]
    ws_minus = w_score[0, cd:]
    smat = jnp.zeros((G * cd, n_concept), dtype=x.dtype)
    for i in range(n_concept):
        smat = smat.at[i * cd:(i + 1) * cd, i].set(ws_plus)
        smat = smat.at[(i + 1) * cd:(i + 2) * cd, i].set(ws_minus)

    # Expansion matrix R: broadcasts score i over its cd output lanes.
    rmat = jnp.repeat(jnp.eye(n_concept, dtype=x.dtype), cd, axis=1)

    bs = b_score.reshape(1)

    # N-tiling: full N if it fits, else multiples-of-8 tiles (pipelined, parallel axis).
    tile_n = N if N <= max_tile_n else max_tile_n
    grid = (pl.cdiv(N, tile_n),)

    concepts, scores = pl.pallas_call(
        cem_kernel,
        out_shape=(jax.ShapeDtypeStruct((N, n_concept * cd), x.dtype),
                   jax.ShapeDtypeStruct((N, n_concept), x.dtype)),
        grid_spec=pltpu.PrefetchScalarGridSpec(
            num_scalar_prefetch=0,
            grid=grid,
            in_specs=[
                pl.BlockSpec((tile_n, D), lambda i: (i, 0)),                 # x tile
                pl.BlockSpec((D, G * cd), lambda i: (0, 0)),                 # fused weights (resident)
                pl.BlockSpec((1, G * cd), lambda i: (0, 0)),                 # fused biases
                pl.BlockSpec((G * cd, n_concept), lambda i: (0, 0)),         # score selection matrix
                pl.BlockSpec((n_concept, n_concept * cd), lambda i: (0, 0)), # expansion matrix
                pl.BlockSpec(memory_space=pltpu.MemorySpace.SMEM),           # score bias scalar
            ],
            out_specs=[
                pl.BlockSpec((tile_n, n_concept * cd), lambda i: (i, 0)),
                pl.BlockSpec((tile_n, n_concept), lambda i: (i, 0)),
            ],
        ),
        compiler_params=pltpu.CompilerParams(
            dimension_semantics=("parallel",)),
    )(xf, w_flat, b_flat, smat, rmat, bs)

    # Already in the layout torch produces: cat(concepts, 2) and stack(activations, 2).
    concepts_out = concepts.reshape(B, L, n_concept * cd)
    scores_out = scores.reshape(B, L, n_concept, 1)
    return concepts_out, scores_out


def cem_reference(x, W_all, b_all, w_score, b_score, n_concept):
    """Pure-JAX replica of the PyTorch forward (for verification)."""
    def leaky(v):
        return jnp.where(v >= 0, v, NEG_SLOPE * v)
    concepts, acts = [], []
    for i in range(n_concept):
        cp = leaky(x @ W_all[i].T + b_all[i])
        cm = leaky(x @ W_all[i + 1].T + b_all[i + 1])
        c = jnp.concatenate([cp, cm], axis=2)
        s = jax.nn.sigmoid(c @ w_score.T + b_score)
        concepts.append(s * cp + (1.0 - s) * cm)
        acts.append(s)
    return jnp.concatenate(concepts, 2), jnp.stack(acts, 2)


if __name__ == "__main__":
    # Small shapes consistent with the module: x is (batch, seq, input_dim).
    B, L = 2, 8
    input_dim, n_concept, concept_dim = 32, 4, 16

    key = jax.random.PRNGKey(0)
    kx, kw, kb, kws, kbs = jax.random.split(key, 5)

    x = jax.random.normal(kx, (B, L, input_dim), dtype=jnp.float32)

    # Deterministic parameter init (torch.nn.Linear-style uniform bounds).
    lim_c = 1.0 / jnp.sqrt(jnp.float32(input_dim))
    W_all = jax.random.uniform(kw, (2 * n_concept, concept_dim, input_dim),
                               minval=-lim_c, maxval=lim_c, dtype=jnp.float32)
    b_all = jax.random.uniform(kb, (2 * n_concept, concept_dim),
                               minval=-lim_c, maxval=lim_c, dtype=jnp.float32)
    lim_s = 1.0 / jnp.sqrt(jnp.float32(2 * concept_dim))
    w_score = jax.random.uniform(kws, (1, 2 * concept_dim),
                                 minval=-lim_s, maxval=lim_s, dtype=jnp.float32)
    b_score = jax.random.uniform(kbs, (1,),
                                 minval=-lim_s, maxval=lim_s, dtype=jnp.float32)

    concepts, activations = cem_forward(x, W_all, b_all, w_score, b_score, n_concept)
    jax.block_until_ready((concepts, activations))

    # Verify against the pure-JAX reference of the torch forward.
    ref_concepts, ref_acts = cem_reference(x, W_all, b_all, w_score, b_score, n_concept)
    assert concepts.shape == (B, L, n_concept * concept_dim)
    assert activations.shape == (B, L, n_concept, 1)
    assert jnp.allclose(concepts, ref_concepts, atol=1e-5, rtol=1e-5)
    assert jnp.allclose(activations, ref_acts, atol=1e-5, rtol=1e-5)

    print("KERNEL_OK")
</pallas_src>

<mosaic_0001>
module attributes {stable_mosaic.version = 11 : i64} {
  func.func @cem_kernel(%arg0: i32, %arg1: memref<16x32xf32, #tpu.memory_space<vmem>>, %arg2: memref<32x80xf32, #tpu.memory_space<vmem>>, %arg3: memref<1x80xf32, #tpu.memory_space<vmem>>, %arg4: memref<80x4xf32, #tpu.memory_space<vmem>>, %arg5: memref<4x64xf32, #tpu.memory_space<vmem>>, %arg6: memref<1xf32, #tpu.memory_space<smem>>, %arg7: memref<16x64xf32, #tpu.memory_space<vmem>>, %arg8: memref<16x4xf32, #tpu.memory_space<vmem>>) attributes {dimension_semantics = [#tpu.dimension_semantics<parallel>], iteration_bounds = array<i64: 1>, scalar_prefetch = 0 : i64, scratch_operands = 0 : i64, tpu.core_type = #tpu.core_type<tc>, window_params = [{transform_indices = @transform_0, window_bounds = array<i64: 16, 32>}, {pipeline_mode = #tpu.pipeline_mode<synchronous>, transform_indices = @transform_1, window_bounds = array<i64: 32, 80>}, {pipeline_mode = #tpu.pipeline_mode<synchronous>, transform_indices = @transform_2, window_bounds = array<i64: 1, 80>}, {pipeline_mode = #tpu.pipeline_mode<synchronous>, transform_indices = @transform_3, window_bounds = array<i64: 80, 4>}, {pipeline_mode = #tpu.pipeline_mode<synchronous>, transform_indices = @transform_4, window_bounds = array<i64: 4, 64>}, {transform_indices = @transform_5, window_bounds = array<i64: 1>}, {transform_indices = @transform_6, window_bounds = array<i64: 16, 64>}, {transform_indices = @transform_7, window_bounds = array<i64: 16, 4>}]} {
    %c0 = arith.constant 0 : index
    %c0_0 = arith.constant 0 : index
    %0 = vector.load %arg1[%c0, %c0_0] : memref<16x32xf32, #tpu.memory_space<vmem>>, vector<16x32xf32>
    %c0_1 = arith.constant 0 : index
    %c0_2 = arith.constant 0 : index
    %1 = vector.load %arg2[%c0_1, %c0_2] : memref<32x80xf32, #tpu.memory_space<vmem>>, vector<32x80xf32>
    %cst = arith.constant dense<0.000000e+00> : vector<16x80xf32>
    %2 = tpu.matmul %0, %1, %cst {dimension_numbers = #tpu.dot_dimension_numbers<[1], [0], [0], [1], [0, 0, 1, 1], [], []>} : vector<16x32xf32>, vector<32x80xf32>, vector<16x80xf32> -> vector<16x80xf32>
    %c0_3 = arith.constant 0 : index
    %c0_4 = arith.constant 0 : index
    %3 = vector.load %arg3[%c0_3, %c0_4] : memref<1x80xf32, #tpu.memory_space<vmem>>, vector<1x80xf32>
    %4 = vector.broadcast %3 : vector<1x80xf32> to vector<16x80xf32>
    %5 = arith.addf %2, %4 : vector<16x80xf32>
    %cst_5 = arith.constant 0.000000e+00 : f32
    %6 = vector.broadcast %cst_5 : f32 to vector<16x80xf32>
    %7 = arith.cmpf oge, %5, %6 : vector<16x80xf32>
    %cst_6 = arith.constant 0.00999999977 : f32
    %8 = vector.broadcast %cst_6 : f32 to vector<16x80xf32>
    %9 = arith.mulf %8, %5 : vector<16x80xf32>
    %10 = arith.select %7, %5, %9 : vector<16x80xi1>, vector<16x80xf32>
    %11 = vector.extract_strided_slice %10 {offsets = [0, 0], sizes = [16, 64], strides = [1, 1]} : vector<16x80xf32> to vector<16x64xf32>
    %12 = vector.extract_strided_slice %10 {offsets = [0, 16], sizes = [16, 64], strides = [1, 1]} : vector<16x80xf32> to vector<16x64xf32>
    %c0_7 = arith.constant 0 : index
    %c0_8 = arith.constant 0 : index
    %13 = vector.load %arg4[%c0_7, %c0_8] : memref<80x4xf32, #tpu.memory_space<vmem>>, vector<80x4xf32>
    %cst_9 = arith.constant dense<0.000000e+00> : vector<16x4xf32>
    %14 = tpu.matmul %10, %13, %cst_9 {dimension_numbers = #tpu.dot_dimension_numbers<[1], [0], [0], [1], [0, 0, 1, 1], [], []>} : vector<16x80xf32>, vector<80x4xf32>, vector<16x4xf32> -> vector<16x4xf32>
    %c0_10 = arith.constant 0 : index
    %15 = memref.load %arg6[%c0_10] : memref<1xf32, #tpu.memory_space<smem>>
    %16 = vector.broadcast %15 : f32 to vector<16x4xf32>
    %17 = arith.addf %14, %16 : vector<16x4xf32>
    %18 = arith.negf %17 : vector<16x4xf32>
    %19 = math.exp %18 : vector<16x4xf32>
    %cst_11 = arith.constant 1.000000e+00 : f32
    %20 = vector.broadcast %cst_11 : f32 to vector<16x4xf32>
    %21 = arith.addf %20, %19 : vector<16x4xf32>
    %22 = arith.divf %20, %21 : vector<16x4xf32>
    %c0_12 = arith.constant 0 : index
    %c0_13 = arith.constant 0 : index
    %23 = vector.load %arg5[%c0_12, %c0_13] : memref<4x64xf32, #tpu.memory_space<vmem>>, vector<4x64xf32>
    %cst_14 = arith.constant dense<0.000000e+00> : vector<16x64xf32>
    %24 = tpu.matmul %22, %23, %cst_14 {dimension_numbers = #tpu.dot_dimension_numbers<[1], [0], [0], [1], [0, 0, 1, 1], [], []>} : vector<16x4xf32>, vector<4x64xf32>, vector<16x64xf32> -> vector<16x64xf32>
    %25 = arith.mulf %24, %11 : vector<16x64xf32>
    %cst_15 = arith.constant 1.000000e+00 : f32
    %26 = vector.broadcast %cst_15 : f32 to vector<16x64xf32>
    %27 = arith.subf %26, %24 : vector<16x64xf32>
    %28 = arith.mulf %27, %12 : vector<16x64xf32>
    %29 = arith.addf %25, %28 : vector<16x64xf32>
    %c0_16 = arith.constant 0 : index
    %c0_17 = arith.constant 0 : index
    %30 = vector.load %arg7[%c0_16, %c0_17] : memref<16x64xf32, #tpu.memory_space<vmem>>, vector<16x64xf32>
    tpu.vector_store %arg7[%c0_16, %c0_17], %29 {strides = array<i32>} : memref<16x64xf32, #tpu.memory_space<vmem>>, vector<16x64xf32>,
    %c0_18 = arith.constant 0 : index
    %c0_19 = arith.constant 0 : index
    %31 = vector.load %arg8[%c0_18, %c0_19] : memref<16x4xf32, #tpu.memory_space<vmem>>, vector<16x4xf32>
    tpu.vector_store %arg8[%c0_18, %c0_19], %22 {strides = array<i32>} : memref<16x4xf32, #tpu.memory_space<vmem>>, vector<16x4xf32>,
    return
  }
  func.func @transform_0(%arg0: i32) -> (i32, i32) {
    %c0_i32 = arith.constant 0 : i32
    %c0_i32_0 = arith.constant 0 : i32
    return %arg0, %c0_i32 : i32, i32
  }
  func.func @transform_1(%arg0: i32) -> (i32, i32) {
    %c0_i32 = arith.constant 0 : i32
    %c0_i32_0 = arith.constant 0 : i32
    %c0_i32_1 = arith.constant 0 : i32
    return %c0_i32, %c0_i32_0 : i32, i32
  }
  func.func @transform_2(%arg0: i32) -> (i32, i32) {
    %c0_i32 = arith.constant 0 : i32
    %c0_i32_0 = arith.constant 0 : i32
    %c0_i32_1 = arith.constant 0 : i32
    return %c0_i32, %c0_i32_0 : i32, i32
  }
  func.func @transform_3(%arg0: i32) -> (i32, i32) {
    %c0_i32 = arith.constant 0 : i32
    %c0_i32_0 = arith.constant 0 : i32
    %c0_i32_1 = arith.constant 0 : i32
    return %c0_i32, %c0_i32_0 : i32, i32
  }
  func.func @transform_4(%arg0: i32) -> (i32, i32) {
    %c0_i32 = arith.constant 0 : i32
    %c0_i32_0 = arith.constant 0 : i32
    %c0_i32_1 = arith.constant 0 : i32
    return %c0_i32, %c0_i32_0 : i32, i32
  }
  func.func @transform_5(%arg0: i32) -> i32 {
    %c0_i32 = arith.constant 0 : i32
    %c0_i32_0 = arith.constant 0 : i32
    return %c0_i32 : i32
  }
  func.func @transform_6(%arg0: i32) -> (i32, i32) {
    %c0_i32 = arith.constant 0 : i32
    %c0_i32_0 = arith.constant 0 : i32
    return %arg0, %c0_i32 : i32, i32
  }
  func.func @transform_7(%arg0: i32) -> (i32, i32) {
    %c0_i32 = arith.constant 0 : i32
    %c0_i32_0 = arith.constant 0 : i32
    return %arg0, %c0_i32 : i32, i32
  }
}

</mosaic_0001>

<bundles_post_ra>
// kernel: tpu_custom_call.1
= control target key start
LH: loop header
LB: loop body
LE: loop exit
PB: predicated region body
PF: predicated region fallthrough
CT: control target
= control target key end

     0   :  { %vm40_vm0 = vcmask 261120   ;;  %s615_s0 = inlined_call_operand.vmem [shape: f32[16,32], index: 0, kind: input, shape index: {}]   ;;  %s616_s1 = inlined_call_operand.vmem [shape: f32[32,80], index: 1, kind: input, shape index: {}]   ;;  %s617_s2 = inlined_call_operand.vmem [shape: f32[1,80], index: 2, kind: input, shape index: {}]   ;;  %s618_s3 = inlined_call_operand.vmem [shape: f32[80,4], index: 3, kind: input, shape index: {}]   ;;  %s619_s4 = inlined_call_operand.vmem [shape: f32[4,64], index: 4, kind: input, shape index: {}]   ;;  %s620_s5 = inlined_call_operand.<no memory space> [shape: f32[1], index: 5, kind: input, shape index: {}]   ;;  %s621_s6 = inlined_call_operand.hbm [shape: f32[16,64], index: 6, kind: output, shape index: {0}]   ;;  %s622_s7 = inlined_call_operand.vmem [shape: f32[16,4], index: 7, kind: output, shape index: {1}]  }
   0x1   :  { %v29_v0 = vld [vmem:[%s616_s1] sm:$0xff]  ;;  %v30_v1 = vld [vmem:[%s616_s1 + $0x8] sm:$0xff]  ;;  %v31_v2 = vld [vmem:[%s616_s1 + $0x10] sm:$0xff] }
   0x2   :  { %v430_v3 = vpack.c.bf16 %v30_v1, %v29_v0  ;;  %v32_v4 = vld [vmem:[%s616_s1 + $0x18] sm:$0xff]  ;;  %v27_v5 = vld [vmem:[%s615_s0] sm:$0xff]  ;;  %v129_v8 = vld [vmem:[%s618_s3 + $0x8] sm:$0xff] }
   0x3   :  { %v434_v6 = vpack.c.bf16 %v32_v4, %v31_v2  ;;  %399 = vmatprep.mubr.msk.f32.mxu0 %vm40_vm0, %v27_v5  ;;  %v128_v7 = vld [vmem:[%s618_s3] sm:$0xff]  ;;  %v130_v9 = vld [vmem:[%s618_s3 + $0x10] sm:$0xff]  ;;  %v131_v11 = vld [vmem:[%s618_s3 + $0x18] sm:$0xff] }
   0x4   :  { %431 = vmatprep.subr.bf16.mxu0 %v430_v3  ;;  %v438_v10 = vpack.c.bf16 %v129_v8, %v128_v7  ;;  %v442_v12 = vpack.c.bf16 %v131_v11, %v130_v9  ;;  %v132_v13 = vld [vmem:[%s618_s3 + $0x20] sm:$0xff]  ;;  %v133_v14 = vld [vmem:[%s618_s3 + $0x28] sm:$0xff] }
   0x5   :  { %433 = vmatpush3.bf16.msra.mxu0 %v430_v3 }
   0x6   :  { %14 = vsyncpa [#allocation4], 0  ;;  %435 = vmatprep.subr.bf16.mxu0 %v434_v6  ;;  %439 = vmatprep.subr.bf16.mxu1 %v438_v10  ;;  %v446_v15 = vpack.c.bf16 %v133_v14, %v132_v13  ;;  %v28_v16 = vld [vmem:[%s615_s0 + $0x8] sm:$0xff]  ;;  %v134_v17 = vld [vmem:[%s618_s3 + $0x30] sm:$0xff]  ;;  %vm140_vm3 = vcmask 654336   ;;  %s494_s10 = smov 112   ;;  %v139_v33 = vstv %s620_s5 }
   0x7   :  { %441 = vmatpush3.bf16.msra.mxu1 %v438_v10  ;;  %v135_v18 = vld [vmem:[%s618_s3 + $0x38] sm:$0xff]  ;;  %v136_v20 = vld [vmem:[%s618_s3 + $0x40] sm:$0xff]  ;;  %v137_v21 = vld [vmem:[%s618_s3 + $0x48] sm:$0xff]  ;;  %vm242_vm4 = vcmask 1043456   ;;  %vm235_vm5 = vcmask 31744   ;;  %s495_s15 = smov [#allocation3]  }
   0x8   :  { %443 = vmatprep.subr.bf16.mxu1 %v442_v12  ;;  %v450_v19 = vpack.c.bf16 %v135_v18, %v134_v17  ;;  %v454_v22 = vpack.c.bf16 %v137_v21, %v136_v20  ;;  %v360_v23 = vld [vmem:[%s617_s2] ss:$0 sm:$0xff]  ;;  %s345_s16 = sshll.u32 %s495_s15, 4  ;;  %vm335_vm6 = vcmask 523264   ;;  %s346_s16 = int_to_ptr.vmem [resolvable:$true] %s345_s16 }
   0x9   :  { %437 = vmatpush3.bf16.msra.mxu0 %v434_v6  ;;  %v234_v32 = vld [vmem:[%s619_s4] sm:$0xf]  ;;  %p475_p1 = scmp.lt.s32.totalorder %s346_s16, %s346_s16 }
   0xa   :  { %425 = vmatprep.subr.msk.mxu0 %vm242_vm4, %v234_v32 }
   0xb   :  { %445 = vmatpush3.bf16.msra.mxu1 %v442_v12 }
   0xc   :  { %400 = vmatmul.mubr.msk.f32.vlgmr.msra.gmra.mrb[0].mxu0 %vm40_vm0, %v28_v16  ;;  %447 = vmatprep.subr.bf16.mxu1 %v446_v15 }
   0xd   :  { %426 = vmatpush3.msk.msra.mxu0 %vm242_vm4, %v234_v32 }
   0xf   :  { %449 = vmatpush3.bf16.msra.mxu1 %v446_v15 }
  0x10   :  { %451 = vmatprep.subr.bf16.mxu1 %v450_v19 }
  0x13   :  { %453 = vmatpush3.bf16.msra.mxu1 %v450_v19 }
  0x14   :  { %455 = vmatprep.subr.bf16.mxu1 %v454_v22 }
  0x17   :  { %457 = vmatpush3.bf16.msra.mxu1 %v454_v22 }
  0xdf   :  { %v401_v24 = vpop.f32.mrb[0].mxu0 }
  0xe0   :  { %v119_v25 = vadd.f32 %v401_v24, %v360_v23  ;;  %v113_v26 = vpop.f32.mrb[1].mxu0 }
  0xe1   :  { %v114_v27 = vadd.f32 %v360_v23, %v113_v26 }
  0xe2   :  { %v125_v28 = vmul.f32 0.01, %v119_v25  ;;  %vm123_vm1 = vcmp.ge.f32.partialorder %v119_v25, 0.0 }
  0xe3   :  { %v124_v29 = vmul.f32 0.01, %v114_v27  ;;  %vm122_vm2 = vcmp.ge.f32.partialorder %v114_v27, 0.0 }
  0xe4   :  { %v127_v31 = vsel %vm123_vm1, %v119_v25, %v125_v28 }
  0xe5   :  { %v126_v30 = vsel %vm122_vm2, %v114_v27, %v124_v29 }
  0xe6   :  { %325 = vrot.lane.b32.xlu0 %v126_v30, %s494_s10  ;;  %422 = vmatprep.mubr.msk.f32.mxu1 %vm140_vm3, %v126_v30 }
  0xe7   :  { %423 = vmatmul.mubr.msk.f32.vlgmr.msra.gmra.mrb[0].mxu1 %vm140_vm3, %v127_v31 }
  0xea   :  { %327 = vrot.lane.b32.xlu0 %v127_v31, %s494_s10 }
 0x158   :  { %v326_v46 = vpop.permute.xlu0 %325 }
 0x15c   :  { %v328_v50 = vpop.permute.xlu0 %327 }
 0x1ba   :  { %v424_v34 = vpop.f32.mrb[0].mxu1 }
 0x1bb   :  { %v219_v35 = vadd.f32 %v424_v34, %v139_v33  ;;  %v213_v36 = vpop.f32.mrb[1].mxu1 }
 0x1bc   :  { %v214_v37 = vadd.f32 %v213_v36, %v139_v33 }
 0x1bd   :  { %v366_v38 = vmul.f32 -1.442695, %v219_v35 }
 0x1be   :  { %v365_v39 = vmul.f32 -1.442695, %v214_v37 }
 0x1bf   :  { %462 = vpow2.f32 %v366_v38 }
 0x1c0   :  { %464 = vpow2.f32 %v365_v39 }
 0x1c9   :  { %v463_v40 = vpop.eup %462 }
 0x1ca   :  { %v465_v41 = vpop.eup %464  ;;  %v229_v42 = vadd.f32 1.0, %v463_v40 }
 0x1cb   :  { %v228_v43 = vadd.f32 1.0, %v465_v41 }
 0x1cc   :  { %466 = vrcp.f32 %v229_v42 }
 0x1cd   :  { %468 = vrcp.f32 %v228_v43 }
 0x1d6   :  { %v467_v44 = vpop.eup %466 }
 0x1d7   :  { %v469_v45 = vpop.eup %468  ;;  %339 = vst.msk [vmem:[%s622_s7 + $0x8] sm:$0xff] %vm235_vm5, %v467_v44 }
 0x1d8   :  { %427 = vmatprep.mubr.msk.f32.mxu0 %vm235_vm5, %v469_v45  ;;  %338 = vst.msk [vmem:[%s622_s7] sm:$0xff] %vm235_vm5, %v469_v45  ;;  %s470_s7 = scalar_lea.vmem %s346_s16, 256 }
 0x1d9   :  { %428 = vmatmul.mubr.msk.f32.vlgmr.msra.gmra.mrb[2].mxu0 %vm235_vm5, %v467_v44  ;;  %p471_p0 = scmp.ne.s32.totalorder %s346_s16, %s470_s7  ;;  %p476_p2 = scmp.lt.s32.totalorder %s470_s7, %s470_s7 }
 0x1db   :  { %p477_p3 = por %p476_p2, %p475_p1 }
 0x1dd   :  { %p478_p4 = pnand %p477_p3, %p471_p0 }
 0x2ac   :  { %v429_v47 = vpop.f32.mrb[2].mxu0 }
 0x2ad   :  { %v324_v48 = vsub.f32 1.0, %v429_v47  ;;  %v312_v49 = vpop.f32.mrb[3].mxu0  ;;  %v322_v52 = vmul.f32 %v429_v47, %v127_v31 }
 0x2ae   :  { %v323_v51 = vsub.f32 1.0, %v312_v49  ;;  %v321_v54 = vmul.f32 %v312_v49, %v126_v30 }
 0x2af   :  { %v332_v53 = vmul.f32 %v328_v50, %v324_v48 }
 0x2b0   :  { %v331_v55 = vmul.f32 %v326_v46, %v323_v51 }
 0x2b1   :  { %v334_v56 = vadd.f32 %v332_v53, %v322_v52 }
 0x2b2   :  { %v333_v57 = vadd.f32 %v331_v55, %v321_v54 }
 0x2b3   :  { %337 = vst.msk [vmem:[#allocation3 + $0x8] sm:$0xff] %vm335_vm6, %v334_v56 }
 0x2b4   :  { %336 = vst.msk [vmem:[#allocation3] sm:$0xff] %vm335_vm6, %v333_v57 }
 0x2b5   :  { %481 = shalt.err (!%p478_p4)
}
 0x2b6   :  { %s482_s18 = scalar_lea.hbm %s621_s6, 256 }
 0x2b7   :  { %p483_p5 = scmp.ne.s32.totalorder %s621_s6, %s482_s18  ;;  %p486_p6 = scmp.lt.u32.totalorder %s482_s18, %s621_s6 }
 0x2b9   :  { %p488_p7 = pnand %p486_p6, %p483_p5 }
 0x2bb   :  { %491 = shalt.err (!%p488_p7)
}
 0x2bc   :  { %s496_s23 = smov 128   ;;  %s497_s24 = smov 8  }
 0x2bd   :  { %351 = dma.vmem_to_hbm [thread:$0]  %s346_s16, 256, %s621_s6, [#allocation4], %s496_s23, %s496_s23, %s497_s24  }
 0x2be   :  { %492 = dma.done.wait [#allocation4], 256  }
 0x2bf   :  { %493 = vsyncadd [#allocation4], 4294967040 }
 0x2c0   :  { %359 = vsyncpa [#allocation4], 1 }

</bundles_post_ra>
